<compile_context>
chip_gen: v6e
topology: v6e:2x2x1
jax: 0.10.0
libtpu: 0.0.40
codegen_flags: <defaults>
</compile_context>

<pallas_src>
import jax
import jax.numpy as jnp
from jax import lax
from jax.experimental import pallas as pl
from jax.experimental.pallas import tpu as pltpu


def rbm_kernel(x_ref, w_ref, hb_ref, vb_ref, u_ref, vprob_ref, hstate_ref):
    x = x_ref[...]                       # (TB, V) f32
    w = w_ref[...]                       # (V,  H) f32 (resident across tiles)

    # hidden_prob = sigmoid(x @ W + h_bias)
    h_lin = jnp.dot(x, w, preferred_element_type=jnp.float32) + hb_ref[...]
    h_prob = jax.nn.sigmoid(h_lin)                        # (TB, H)

    # hidden_state = bernoulli(hidden_prob): sample = (u < p)
    h_state = (u_ref[...] < h_prob).astype(jnp.float32)   # (TB, H) in {0., 1.}

    # visible_prob = sigmoid(hidden_state @ W.T + v_bias)
    # Expressed as a transposed contraction so the MXU consumes W directly
    # (no in-kernel transpose of W).
    v_lin = lax.dot_general(
        h_state, w,
        dimension_numbers=(((1,), (1,)), ((), ())),
        preferred_element_type=jnp.float32) + vb_ref[...]
    vprob_ref[...] = jax.nn.sigmoid(v_lin)                # (TB, V)
    hstate_ref[...] = h_state


def rbm_forward(x, W, h_bias, v_bias, u):
    """x: (B, V), W: (V, H), h_bias: (H,), v_bias: (V,), u: (B, H) uniforms."""
    B, V = x.shape
    H = W.shape[1]
    assert u.shape == (B, H)

    # Batch tile: 128 rows when possible (MXU-aligned), else one tile = whole batch.
    TB = 128 if (B % 128 == 0) else B
    grid = (B // TB,)

    cost = pl.CostEstimate(
        flops=4 * B * V * H,                       # two (B,V)x(V,H)-sized matmuls
        transcendentals=B * (V + H),               # sigmoids
        bytes_accessed=4 * (2 * B * V + 2 * B * H + V * H + V + H),
    )

    return pl.pallas_call(
        rbm_kernel,
        out_shape=(
            jax.ShapeDtypeStruct((B, V), jnp.float32),   # visible_prob
            jax.ShapeDtypeStruct((B, H), jnp.float32),   # hidden_state
        ),
        grid=grid,
        in_specs=[
            pl.BlockSpec((TB, V), lambda i: (i, 0)),     # x        (batch-tiled)
            pl.BlockSpec((V, H), lambda i: (0, 0)),      # W        (resident)
            pl.BlockSpec((1, H), lambda i: (0, 0)),      # h_bias   (resident)
            pl.BlockSpec((1, V), lambda i: (0, 0)),      # v_bias   (resident)
            pl.BlockSpec((TB, H), lambda i: (i, 0)),     # uniforms (batch-tiled)
        ],
        out_specs=[
            pl.BlockSpec((TB, V), lambda i: (i, 0)),     # visible_prob
            pl.BlockSpec((TB, H), lambda i: (i, 0)),     # hidden_state
        ],
        compiler_params=pltpu.CompilerParams(
            dimension_semantics=("parallel",)),          # batch tiles split across TCs
        cost_estimate=cost,
    )(x, W, h_bias.reshape(1, H), v_bias.reshape(1, V), u)


if __name__ == "__main__":
    # Small, deterministic, lane-aligned problem: batch=256, visible=256, hidden=128.
    B, VISIBLE, HIDDEN = 256, 256, 128
    key = jax.random.PRNGKey(0)
    kx, kw, kv, kh, ku = jax.random.split(key, 5)

    x = jax.random.normal(kx, (B, VISIBLE), dtype=jnp.float32)
    W = jax.random.normal(kw, (VISIBLE, HIDDEN), dtype=jnp.float32)
    v_bias = jax.random.normal(kv, (VISIBLE,), dtype=jnp.float32)
    h_bias = jax.random.normal(kh, (HIDDEN,), dtype=jnp.float32)
    # Uniform draws for the Bernoulli sampling (host-side; bernoulli(p) == (u < p)).
    u = jax.random.uniform(ku, (B, HIDDEN), dtype=jnp.float32)

    visible_prob, hidden_state = rbm_forward(x, W, h_bias, v_bias, u)
    jax.block_until_ready((visible_prob, hidden_state))

    # Pure-JAX reference with the same uniforms.
    h_prob_ref = jax.nn.sigmoid(x @ W + h_bias)
    h_state_ref = (u < h_prob_ref).astype(jnp.float32)
    v_prob_ref = jax.nn.sigmoid(h_state_ref @ W.T + v_bias)

    assert visible_prob.shape == (B, VISIBLE)
    assert hidden_state.shape == (B, HIDDEN)
    assert bool(jnp.all((visible_prob >= 0.0) & (visible_prob <= 1.0)))
    assert bool(jnp.all((hidden_state == 0.0) | (hidden_state == 1.0)))
    assert bool(jnp.all(hidden_state == h_state_ref))
    assert bool(jnp.allclose(visible_prob, v_prob_ref, atol=1e-5, rtol=1e-5))

    print("KERNEL_OK")
</pallas_src>

<mosaic_0001>
module attributes {stable_mosaic.version = 11 : i64} {
  func.func @rbm_kernel(%arg0: i32, %arg1: memref<128x256xf32, #tpu.memory_space<vmem>>, %arg2: memref<256x128xf32, #tpu.memory_space<vmem>>, %arg3: memref<1x128xf32, #tpu.memory_space<vmem>>, %arg4: memref<1x256xf32, #tpu.memory_space<vmem>>, %arg5: memref<128x128xf32, #tpu.memory_space<vmem>>, %arg6: memref<128x256xf32, #tpu.memory_space<vmem>>, %arg7: memref<128x128xf32, #tpu.memory_space<vmem>>) attributes {dimension_semantics = [#tpu.dimension_semantics<parallel>], iteration_bounds = array<i64: 2>, scalar_prefetch = 0 : i64, scratch_operands = 0 : i64, tpu.core_type = #tpu.core_type<tc>, window_params = [{transform_indices = @transform_0, window_bounds = array<i64: 128, 256>}, {pipeline_mode = #tpu.pipeline_mode<synchronous>, transform_indices = @transform_1, window_bounds = array<i64: 256, 128>}, {pipeline_mode = #tpu.pipeline_mode<synchronous>, transform_indices = @transform_2, window_bounds = array<i64: 1, 128>}, {pipeline_mode = #tpu.pipeline_mode<synchronous>, transform_indices = @transform_3, window_bounds = array<i64: 1, 256>}, {transform_indices = @transform_4, window_bounds = array<i64: 128, 128>}, {transform_indices = @transform_5, window_bounds = array<i64: 128, 256>}, {transform_indices = @transform_6, window_bounds = array<i64: 128, 128>}]} {
    %c0 = arith.constant 0 : index
    %c0_0 = arith.constant 0 : index
    %0 = vector.load %arg1[%c0, %c0_0] : memref<128x256xf32, #tpu.memory_space<vmem>>, vector<128x256xf32>
    %c0_1 = arith.constant 0 : index
    %c0_2 = arith.constant 0 : index
    %1 = vector.load %arg2[%c0_1, %c0_2] : memref<256x128xf32, #tpu.memory_space<vmem>>, vector<256x128xf32>
    %cst = arith.constant dense<0.000000e+00> : vector<128x128xf32>
    %2 = tpu.matmul %0, %1, %cst {dimension_numbers = #tpu.dot_dimension_numbers<[1], [0], [0], [1], [0, 0, 1, 1], [], []>} : vector<128x256xf32>, vector<256x128xf32>, vector<128x128xf32> -> vector<128x128xf32>
    %c0_3 = arith.constant 0 : index
    %c0_4 = arith.constant 0 : index
    %3 = vector.load %arg3[%c0_3, %c0_4] : memref<1x128xf32, #tpu.memory_space<vmem>>, vector<1x128xf32>
    %4 = vector.broadcast %3 : vector<1x128xf32> to vector<128x128xf32>
    %5 = arith.addf %2, %4 : vector<128x128xf32>
    %6 = arith.negf %5 : vector<128x128xf32>
    %7 = math.exp %6 : vector<128x128xf32>
    %cst_5 = arith.constant 1.000000e+00 : f32
    %8 = vector.broadcast %cst_5 : f32 to vector<128x128xf32>
    %9 = arith.addf %8, %7 : vector<128x128xf32>
    %10 = arith.divf %8, %9 : vector<128x128xf32>
    %c0_6 = arith.constant 0 : index
    %c0_7 = arith.constant 0 : index
    %11 = vector.load %arg5[%c0_6, %c0_7] : memref<128x128xf32, #tpu.memory_space<vmem>>, vector<128x128xf32>
    %12 = arith.cmpf olt, %11, %10 : vector<128x128xf32>
    %13 = arith.extui %12 : vector<128x128xi1> to vector<128x128xi32>
    %14 = arith.sitofp %13 : vector<128x128xi32> to vector<128x128xf32>
    %cst_8 = arith.constant dense<0.000000e+00> : vector<128x256xf32>
    %15 = tpu.matmul %14, %1, %cst_8 {dimension_numbers = #tpu.dot_dimension_numbers<[1], [1], [0], [0], [0, 0, 1, 0], [], []>} : vector<128x128xf32>, vector<256x128xf32>, vector<128x256xf32> -> vector<128x256xf32>
    %c0_9 = arith.constant 0 : index
    %c0_10 = arith.constant 0 : index
    %16 = vector.load %arg4[%c0_9, %c0_10] : memref<1x256xf32, #tpu.memory_space<vmem>>, vector<1x256xf32>
    %17 = vector.broadcast %16 : vector<1x256xf32> to vector<128x256xf32>
    %18 = arith.addf %15, %17 : vector<128x256xf32>
    %19 = arith.negf %18 : vector<128x256xf32>
    %20 = math.exp %19 : vector<128x256xf32>
    %cst_11 = arith.constant 1.000000e+00 : f32
    %21 = vector.broadcast %cst_11 : f32 to vector<128x256xf32>
    %22 = arith.addf %21, %20 : vector<128x256xf32>
    %23 = arith.divf %21, %22 : vector<128x256xf32>
    %c0_12 = arith.constant 0 : index
    %c0_13 = arith.constant 0 : index
    %24 = vector.load %arg6[%c0_12, %c0_13] : memref<128x256xf32, #tpu.memory_space<vmem>>, vector<128x256xf32>
    tpu.vector_store %arg6[%c0_12, %c0_13], %23 {strides = array<i32>} : memref<128x256xf32, #tpu.memory_space<vmem>>, vector<128x256xf32>,
    %c0_14 = arith.constant 0 : index
    %c0_15 = arith.constant 0 : index
    %25 = vector.load %arg7[%c0_14, %c0_15] : memref<128x128xf32, #tpu.memory_space<vmem>>, vector<128x128xf32>
    tpu.vector_store %arg7[%c0_14, %c0_15], %14 {strides = array<i32>} : memref<128x128xf32, #tpu.memory_space<vmem>>, vector<128x128xf32>,
    return
  }
  func.func @transform_0(%arg0: i32) -> (i32, i32) {
    %c0_i32 = arith.constant 0 : i32
    %c0_i32_0 = arith.constant 0 : i32
    return %arg0, %c0_i32 : i32, i32
  }
  func.func @transform_1(%arg0: i32) -> (i32, i32) {
    %c0_i32 = arith.constant 0 : i32
    %c0_i32_0 = arith.constant 0 : i32
    %c0_i32_1 = arith.constant 0 : i32
    return %c0_i32, %c0_i32_0 : i32, i32
  }
  func.func @transform_2(%arg0: i32) -> (i32, i32) {
    %c0_i32 = arith.constant 0 : i32
    %c0_i32_0 = arith.constant 0 : i32
    %c0_i32_1 = arith.constant 0 : i32
    return %c0_i32, %c0_i32_0 : i32, i32
  }
  func.func @transform_3(%arg0: i32) -> (i32, i32) {
    %c0_i32 = arith.constant 0 : i32
    %c0_i32_0 = arith.constant 0 : i32
    %c0_i32_1 = arith.constant 0 : i32
    return %c0_i32, %c0_i32_0 : i32, i32
  }
  func.func @transform_4(%arg0: i32) -> (i32, i32) {
    %c0_i32 = arith.constant 0 : i32
    %c0_i32_0 = arith.constant 0 : i32
    return %arg0, %c0_i32 : i32, i32
  }
  func.func @transform_5(%arg0: i32) -> (i32, i32) {
    %c0_i32 = arith.constant 0 : i32
    %c0_i32_0 = arith.constant 0 : i32
    return %arg0, %c0_i32 : i32, i32
  }
  func.func @transform_6(%arg0: i32) -> (i32, i32) {
    %c0_i32 = arith.constant 0 : i32
    %c0_i32_0 = arith.constant 0 : i32
    return %arg0, %c0_i32 : i32, i32
  }
}

</mosaic_0001>

<bundles_post_ra>
// kernel: tpu_custom_call.1
= control target key start
LH: loop header
LB: loop body
LE: loop exit
PB: predicated region body
PF: predicated region fallthrough
CT: control target
= control target key end

     0   :  { %s2740_s0 = inlined_call_operand.hbm [shape: f32[256,256], index: 0, kind: input, shape index: {}]   ;;  %s2741_s1 = inlined_call_operand.hbm [shape: f32[256,128], index: 1, kind: input, shape index: {}]   ;;  %s2742_s2 = inlined_call_operand.vmem [shape: f32[1,128], index: 2, kind: input, shape index: {}]   ;;  %s2743_s3 = inlined_call_operand.vmem [shape: f32[1,256], index: 3, kind: input, shape index: {}]   ;;  %s2744_s4 = inlined_call_operand.hbm [shape: f32[256,128], index: 4, kind: input, shape index: {}]   ;;  %s2745_s5 = inlined_call_operand.hbm [shape: f32[256,256], index: 5, kind: output, shape index: {0}]   ;;  %s2746_s6 = inlined_call_operand.hbm [shape: f32[256,128], index: 6, kind: output, shape index: {1}]  }
   0x1   :  { %2751 = sst [smem:[#allocation17_spill]] %s2740_s0 }
   0x2   :  { %12 = vsyncpa [#allocation3], 0 }
   0x3   :  { %14 = vsyncpa [#allocation3 + $0x1], 0 }
   0x4   :  { %15 = vsyncpa [#allocation6], 0 }
   0x5   :  { %16 = vsyncpa [#allocation4], 0 }
   0x6   :  { %18 = vsyncpa [#allocation4 + $0x1], 0 }
   0x7   :  { %19 = vsyncpa [#allocation10], 0 }
   0x8   :  { %21 = vsyncpa [#allocation10 + $0x1], 0  ;;  %s2092_s21 = smov 0   ;;  %s2094_s22 = smov 0  }
   0x9   :  { %s2096_s23 = smov 0   ;;  %s2098_s24 = smov 0  }
   0xa LB: > { %s2113_s25 = sadd.s32 1, %s2040_s24   ;;  %s34_s26 = sadd.s32 1, %s2036_s23  ;;  %s2040_s24 = sphi %s2098_s24, %s2771_s24   ;;  %s2036_s23 = sphi %s2096_s23, %s2770_s23   ;;  %s2032_s22 = sphi %s2094_s22, %s2769_s22   ;;  %s2028_s21 = sphi %s2092_s21, %s2768_s21  }
   0xb   : > { %s31_s27 = ssub.s32 %s2040_s24, %s2113_s25  ;;  %p41_p0 = scmp.ne.s32.totalorder %s2036_s23, %s2032_s22 }
   0xc   : > { %p32_p1 = scmp.eq.s32.totalorder %s31_s27, 0  ;;  %p42_p2 = scmp.eq.s32.totalorder %s2040_s24, 0 }
   0xd   : > { %p1618_p4 = scmp.lt.s32.totalorder %s2040_s24, 2  ;;  %s231_s29 = sand.u32 1, %s2040_s24  }
   0xe   : > { %s2124_s28 = scalar_select %p32_p1, %s2036_s23, %s34_s26  }
   0xf   : > { %p43_p5 = por %p42_p2, %p41_p0  ;;  %s233_s30 = sand.u32 1, %s2036_s23  }
  0x10   : > { %2752 = sst [smem:[#allocation16_spill]] %s2124_s28  ;;  %s1302_s7 = sshll.u32 %s233_s30, 8 }
  0x11   : > { %s1406_s8 = sshll.u32 %s2040_s24, 12  ;;  %s2753_s0 = sld [smem:[#allocation17_spill]] }
  0x12   : > { %s235_s12 = scalar_lea.vmem [#allocation2], %s1302_s7  ;;  %p2139_p6 = pnand %p1618_p4, %p43_p5 }
  0x13   : > { %s243_s13 = sshll.u32 %s235_s12, 4  ;;  %s2145_s15 = scalar_lea.sflag [#allocation3], %s231_s29  ;;  %s2143_s13 = int_to_ptr.vmem [resolvable:$true] %s243_s13 }
  0x14   : > { %p1858_p8 = pneg %p2139_p6 }
  0x17   : > { %s2137_s11 = scalar_lea.hbm %s2753_s0, %s1406_s8  ;;  %s1861_s19 = scalar_lea.hbm %s2753_s0, 8192 }
  0x18   : > { %s1856_s16 = scalar_lea.hbm %s2137_s11, 4096  ;;  %p1862_p11 = scmp.lt.s32.totalorder %s2137_s11, %s2753_s0 }
  0x19   : > { %p1857_p7 = scmp.ne.s32.totalorder %s2137_s11, %s1856_s16  ;;  %p1863_p12 = scmp.lt.s32.totalorder %s1861_s19, %s1856_s16 }
  0x1b   : > { %p1859_p9 = pnand %p1858_p8, %p1857_p7  ;;  %p1864_p13 = por %p1863_p12, %p1862_p11 }
  0x1d   : > { %p1860_p10 = pneg %p1859_p9 }
  0x1f   : > { %p1865_p1 = pnand %p1864_p13, %p1860_p10 }
  0x21   : > { %1868 = shalt.err (!%p1865_p1)
}
  0x22   : > { %s1869_s27 = scalar_lea.vmem %s2143_s13, 4096  ;;  %s2042_s29 = smov [#allocation2]  }
  0x23   : > { %p1870_p2 = scmp.ne.s32.totalorder %s2143_s13, %s1869_s27  ;;  %s1874_s7 = sshll.u32 %s2042_s29, 4  ;;  %s1875_s7 = int_to_ptr.vmem [resolvable:$false] %s1874_s7 }
  0x24   : > { %s1876_s8 = scalar_lea.vmem %s1875_s7, 8192  ;;  %p1877_p7 = scmp.lt.s32.totalorder %s2143_s13, %s1875_s7 }
  0x25   : > { %p1872_p4 = pnand %p1870_p2, %p1858_p8  ;;  %p1878_p9 = scmp.lt.s32.totalorder %s1876_s8, %s1869_s27 }
  0x27   : > { %p1873_p5 = pneg %p1872_p4  ;;  %p1879_p3 = por %p1878_p9, %p1877_p7 }
  0x29   : > { %p1880_p11 = pnand %p1879_p3, %p1873_p5 }
  0x2b   : > { %1883 = shalt.err (!%p1880_p11)
}
  0x2c   : > { %s2043_s9 = smov 256   ;;  %s2044_s10 = smov 16  }
  0x2d   : > { %1606 = dma.hbm_to_vmem [thread:$0]  (!%p2139_p6), %s2137_s11, 4096, %s2143_s13, %s2145_s15, %s2043_s9, %s2043_s9, %s2044_s10  }
  0x2e   : > { %s1306_s12 = sshll.u32 %s233_s30, 7  ;;  %s2175_s18 = sadd.s32 4294967295, %s2040_s24  }
  0x2f   : > { %s257_s16 = scalar_lea.vmem [#allocation7], %s1306_s12  ;;  %s1298_s19 = sadd.s32 4294967294, %s2040_s24  }
  0x30   : > { %s264_s17 = sshll.u32 %s257_s16, 4  ;;  %p47_p3 = scmp.ne.s32.totalorder %s2032_s22, %s2028_s21  ;;  %s2210_s17 = int_to_ptr.vmem [resolvable:$true] %s264_s17 }
  0x31   : > { %p2747_p10 = scmp.eq.s32.totalorder %s2175_s18, 0  ;;  %p160_p12 = scmp.eq.s32.totalorder %s2175_s18, 1 }
  0x32   : > { %p166_p13 = scmp.eq.s32.totalorder %s1298_s19, 1  ;;  %p1299_p1 = scmp.ge.s32.totalorder %s2040_s24, 1 }
  0x33   : > { %p2185_p2 = por %p2747_p10, %p47_p3  ;;  %p2192_p4 = por %p160_p12, %p41_p0 }
  0x34   : > { %p2196_p5 = por %p166_p13, %p47_p3  ;;  %p199_p7 = scmp.lt.s32.totalorder %s2040_s24, 3 }
  0x35   : > { %s2755_s11 = scalar_select %p2185_p2, 1, 0 }
  0x36   : > { %s2756_s30 = scalar_select %p2192_p4, 1, 0 }
  0x37   : > { %s2757_s13 = scalar_select %p2196_p5, 1, 0 }
  0x38   : > { %p2201_p9 = pnand %p1299_p1, %p199_p7  ;;  %s2045_s26 = smov [#allocation5]  }
  0x39   : > { %s211_s27 = sshll.u32 %s2045_s26, 4  ;;  %s1407_s29 = sshll.u32 %s2040_s24, 11  ;;  %s2205_s27 = int_to_ptr.vmem [resolvable:$true] %s211_s27 }
  0x3a   : > { %s2758_s20 = scalar_select %p2201_p9, 1, 0 }
  0x3b   : > { %p1599_p11 = pneg %p2201_p9  ;;  %s2221_s10 = scalar_lea.hbm %s2744_s4, %s1407_s29 }
  0x3c   : > { %s1884_s12 = scalar_lea.hbm %s2221_s10, 2048  ;;  %s1889_s26 = scalar_lea.hbm %s2744_s4, 4096 }
  0x3d   : > { %p2214_p0 = pnand %p1599_p11, %p2747_p10  ;;  %p1885_p3 = scmp.ne.s32.totalorder %s2221_s10, %s1884_s12 }
  0x3e   : > { %p1890_p1 = scmp.lt.s32.totalorder %s2221_s10, %s2744_s4  ;;  %p1891_p7 = scmp.lt.s32.totalorder %s1889_s26, %s1884_s12 }
  0x3f   : > { %p1887_p12 = pnand %p1885_p3, %p1858_p8 }
  0x40   : > { %p1892_p11 = por %p1891_p7, %p1890_p1 }
  0x41   : > { %p1888_p13 = pneg %p1887_p12 }
  0x43   : > { %p1893_p10 = pnand %p1892_p11, %p1888_p13 }
  0x45   : > { %1896 = shalt.err (!%p1893_p10)
}
  0x46   : > { %s1897_s29 = scalar_lea.vmem %s2210_s17, 2048  ;;  %s2046_s8 = smov [#allocation7]  }
  0x47   : > { %p1898_p5 = scmp.ne.s32.totalorder %s2210_s17, %s1897_s29  ;;  %s1902_s9 = sshll.u32 %s2046_s8, 4  ;;  %s1903_s9 = int_to_ptr.vmem [resolvable:$false] %s1902_s9 }
  0x48   : > { %s1904_s16 = scalar_lea.vmem %s1903_s9, 4096  ;;  %p1905_p4 = scmp.lt.s32.totalorder %s2210_s17, %s1903_s9 }
  0x49   : > { %p1900_p3 = pnand %p1898_p5, %p1858_p8  ;;  %p1906_p2 = scmp.lt.s32.totalorder %s1904_s16, %s1897_s29 }
  0x4b   : > { %p1901_p12 = pneg %p1900_p3  ;;  %p1907_p9 = por %p1906_p2, %p1905_p4 }
  0x4d   : > { %p1908_p1 = pnand %p1907_p9, %p1901_p12 }
  0x4f   : > { %1911 = shalt.err (!%p1908_p1)
}
  0x50   : > { %s2047_s0 = smov 128   ;;  %s2048_s28 = smov 8  }
  0x51   : > { %1609 = dma.hbm_to_vmem [thread:$0]  (!%p2139_p6), %s2221_s10, 2048, %s2210_s17, %s2145_s15, %s2047_s0, %s2047_s0, %s2048_s28  }
  0x52   : > { %p1914_p8 = pneg %p2214_p0  ;;  %s1923_s12 = scalar_lea.vmem %s2205_s27, 4096 }
  0x53   : > { %p1924_p10 = scmp.ne.s32.totalorder %s2205_s27, %s1923_s12  ;;  %p1931_p4 = scmp.lt.s32.totalorder %s2205_s27, %s2205_s27 }
  0x54   : > { %p1932_p9 = scmp.lt.s32.totalorder %s1923_s12, %s1923_s12 }
  0x55   : > { %p1926_p5 = pnand %p1924_p10, %p1914_p8 }
  0x56   : > { %p1933_p13 = por %p1932_p9, %p1931_p4 }
  0x57   : > { %p1927_p2 = pneg %p1926_p5 }
  0x59   : > { %p1934_p7 = pnand %p1933_p13, %p1927_p2 }
  0x5b   : > { %1937 = shalt.err (!%p1934_p7)
}
  0x5c   : > { %1602 = dma.hbm_to_vmem [thread:$0]  (!%p2214_p0), %s2741_s1, 4096, %s2205_s27, [#allocation6], %s2047_s0, %s2047_s0, %s2048_s28  }
  0x5d   : > { %p2760_p6 = scmp.ne.s32.totalorder %s2758_s20, 0 }
  0x5e   : > { %s278_s14 = sand.u32 (!%p2760_p6), 1, %s2175_s18   ;;  %s2262_s15 = sand.u32 (!%p2760_p6), 1, %s2032_s22  }
  0x5f   : > { %276 = sbr.rel (%p2760_p6) target bundleno = 677 (0x2a5), region = 40  ;;  %s1310_s17 = sshll.u32 (!%p2760_p6), %s2262_s15, 8 }
  0x60   : > { %s279_s10 = scalar_lea.sflag (!%p2760_p6), [#allocation3], %s278_s14  ;;  %s2267_s7 = scalar_lea.vmem (!%p2760_p6), [#allocation2], %s1310_s17 }
  0x61   : > { %p2761_p11 = scmp.ne.s32.totalorder (!%p2760_p6), %s2755_s11, 0 }
  0x64   : > { %2007 = dma.done.wait (%p2761_p11), %s279_s10, 4096  }
  0x65   : > { %2009 = vsyncadd (%p2761_p11), %s279_s10, 4294963200  ;;  %p2762_p0 = scmp.eq.s32.totalorder %s2175_s18, 0 }
  0x67   : > { %2011 = dma.done.wait (%p2762_p0), [#allocation6], 4096   ;;  %p2763_p3 = pmov %p2762_p0 }
  0x68   : > { %s1312_s20 = sshll.u32 %s2262_s15, 7 }
  0x69   : > { %2013 = vsyncadd (%p2763_p3), [#allocation6], 4294963200  ;;  %s2280_s27 = scalar_lea.vmem [#allocation7], %s1312_s20 }
  0x6a   : > { %2015 = dma.done.wait (%p2761_p11), %s279_s10, 2048  }
  0x6b   : > { %2017 = vsyncadd (%p2761_p11), %s279_s10, 4294965248  ;;  %v2286_v0 = vld [vmem:[#allocation5 + $0xf8] sm:$0xff]  ;;  %v2290_v2 = vld [vmem:[#allocation5 + $0xf0] sm:$0xff]  ;;  %s2499_s8 = scalar_lea.vmem [#allocation9], %s1312_s20  ;;  %s1410_s9 = sshll.u32 %s2175_s18, 11 }
  0x6c   : > { %v2288_v1 = vld [vmem:[#allocation5 + $0x78] sm:$0xff]  ;;  %1411 = vmatprep.subr.mxu0 %v2286_v0  ;;  %v2293_v3 = vld [vmem:[#allocation5 + $0x70] sm:$0xff]  ;;  %1555 = vmatprep.subr.mxu1 %v2286_v0  ;;  %v2297_v4 = vld [vmem:[#allocation5 + $0xe8] sm:$0xff]  ;;  %s1163_s16 = sshll.u32 %s2499_s8, 4  ;;  %s2588_s12 = scalar_lea.hbm %s2746_s6, %s1410_s9  ;;  %s2590_s16 = int_to_ptr.vmem [resolvable:$true] %s1163_s16 }
  0x6d   : > { %1412 = vmatpush3.msra.mxu0 %v2288_v1  ;;  %1571 = vmatpush3.xpose.msra.mxu1 %v2288_v1  ;;  %v2301_v5 = vld [vmem:[#allocation5 + $0x68] sm:$0xff]  ;;  %v2305_v6 = vld [vmem:[#allocation5 + $0xe0] sm:$0xff]  ;;  %v2311_v8 = vld [vmem:[#allocation5 + $0xd8] sm:$0xff]  ;;  %s1133_s19 = scalar_lea.sflag [#allocation10], %s2262_s15  ;;  %s1938_s26 = scalar_lea.vmem %s2590_s16, 2048 }
  0x6e   : > { %1413 = vmatprep.subr.mxu0 %v2290_v2  ;;  %1556 = vmatprep.subr.mxu1 %v2290_v2  ;;  %v2308_v7 = vld [vmem:[#allocation5 + $0x60] sm:$0xff]  ;;  %v2315_v9 = vld [vmem:[#allocation5 + $0x58] sm:$0xff]  ;;  %v2319_v10 = vld [vmem:[#allocation5 + $0xd0] sm:$0xff]  ;;  %p1939_p12 = scmp.ne.s32.totalorder %s2590_s16, %s1938_s26  ;;  %p2764_p1 = scmp.ne.s32.totalorder %s2756_s30, 0 }
  0x6f   : > { %1414 = vmatpush3.msra.mxu0 %v2293_v3  ;;  %v2322_v11 = vld [vmem:[#allocation5 + $0x50] sm:$0xff]  ;;  %v2325_v12 = vld [vmem:[#allocation5 + $0xc8] sm:$0xff]  ;;  %v2333_v15 = vld [vmem:[#allocation5 + $0xc0] sm:$0xff]  ;;  %s2051_s14 = smov [#allocation9]  }
  0x70   : > { %1415 = vmatprep.subr.mxu0 %v2297_v4  ;;  %v339_v13 = vld [vmem:[%s2267_s7 + $0x8] sm:$0xff]  ;;  %v2337_v16 = vld [vmem:[#allocation5 + $0x40] sm:$0xff]  ;;  %v2340_v17 = vld [vmem:[#allocation5 + $0xb8] sm:$0xff]  ;;  %p1940_p8 = pnand %p1939_p12, %p2764_p1  ;;  %s1942_s10 = sshll.u32 %s2051_s14, 4  ;;  %s1943_s10 = int_to_ptr.vmem [resolvable:$false] %s1942_s10 }
  0x71   : > { %1416 = vmatpush3.msra.mxu0 %v2301_v5  ;;  %1572 = vmatpush3.xpose.msra.mxu1 %v2293_v3  ;;  %v2330_v14 = vld [vmem:[#allocation5 + $0x48] sm:$0xff]  ;;  %v2344_v18 = vld [vmem:[#allocation5 + $0x38] sm:$0xff]  ;;  %v2348_v19 = vld [vmem:[#allocation5 + $0xb0] sm:$0xff]  ;;  %p1945_p5 = scmp.lt.s32.totalorder %s2590_s16, %s1943_s10 }
  0x72   : > { %1417 = vmatprep.subr.mxu0 %v2305_v6  ;;  %1557 = vmatprep.subr.mxu1 %v2297_v4  ;;  %v2351_v20 = vld [vmem:[#allocation5 + $0x30] sm:$0xff]  ;;  %v2354_v21 = vld [vmem:[#allocation5 + $0xa8] sm:$0xff]  ;;  %v2362_v23 = vld [vmem:[#allocation5 + $0xa0] sm:$0xff]  ;;  %p1941_p10 = pneg %p1940_p8 }
  0x73   : > { %1418 = vmatpush3.msra.mxu0 %v2308_v7  ;;  %473 = vmatprep.mubr.f32.mxu0 %v339_v13  ;;  %v2358_v22 = vld [vmem:[#allocation5 + $0x28] sm:$0xff]  ;;  %v2365_v24 = vld [vmem:[#allocation5 + $0x20] sm:$0xff]  ;;  %v2368_v25 = vld [vmem:[#allocation5 + $0x98] sm:$0xff] }
  0x74   : > { %1419 = vmatprep.subr.mxu0 %v2311_v8  ;;  %v2372_v26 = vld [vmem:[#allocation5 + $0x18] sm:$0xff]  ;;  %v2376_v27 = vld [vmem:[#allocation5 + $0x90] sm:$0xff]  ;;  %v2382_v29 = vld [vmem:[#allocation5 + $0x88] sm:$0xff] }
  0x75   : > { %1420 = vmatpush3.msra.mxu0 %v2315_v9  ;;  %1573 = vmatpush3.xpose.msra.mxu1 %v2301_v5  ;;  %v2379_v28 = vld [vmem:[#allocation5 + $0x10] sm:$0xff]  ;;  %v2386_v30 = vld [vmem:[#allocation5 + $0x8] sm:$0xff]  ;;  %v2390_v31 = vld [vmem:[#allocation5 + $0x80] sm:$0xff] }
  0x76   : > { %1421 = vmatprep.subr.mxu0 %v2319_v10  ;;  %1558 = vmatprep.subr.mxu1 %v2305_v6  ;;  %v2393_v32 = vld [vmem:[#allocation5] sm:$0xff]  ;;  %v341_v34 = vld [vmem:[%s2267_s7 + $0x18] sm:$0xff]  ;;  %v340_v35 = vld [vmem:[%s2267_s7 + $0x10] sm:$0xff] }
  0x77   : > { %1422 = vmatpush3.msra.mxu0 %v2322_v11  ;;  %v338_v33 = vld [vmem:[%s2267_s7] sm:$0xff]  ;;  %v343_v36 = vld [vmem:[%s2267_s7 + $0x28] sm:$0xff]  ;;  %v345_v38 = vld [vmem:[%s2267_s7 + $0x38] sm:$0xff] }
  0x78   : > { %1423 = vmatprep.subr.mxu0 %v2325_v12  ;;  %v342_v37 = vld [vmem:[%s2267_s7 + $0x20] sm:$0xff]  ;;  %v344_v39 = vld [vmem:[%s2267_s7 + $0x30] sm:$0xff]  ;;  %v347_v40 = vld [vmem:[%s2267_s7 + $0x48] sm:$0xff] }
  0x79   : > { %1424 = vmatpush3.msra.mxu0 %v2330_v14  ;;  %1574 = vmatpush3.xpose.msra.mxu1 %v2308_v7  ;;  %v346_v41 = vld [vmem:[%s2267_s7 + $0x40] sm:$0xff]  ;;  %v349_v42 = vld [vmem:[%s2267_s7 + $0x58] sm:$0xff]  ;;  %v348_v43 = vld [vmem:[%s2267_s7 + $0x50] sm:$0xff] }
  0x7a   : > { %1425 = vmatprep.subr.mxu0 %v2333_v15  ;;  %1559 = vmatprep.subr.mxu1 %v2311_v8  ;;  %v351_v44 = vld [vmem:[%s2267_s7 + $0x68] sm:$0xff]  ;;  %v350_v45 = vld [vmem:[%s2267_s7 + $0x60] sm:$0xff]  ;;  %v353_v46 = vld [vmem:[%s2267_s7 + $0x78] sm:$0xff] }
  0x7b   : > { %1426 = vmatpush3.msra.mxu0 %v2337_v16  ;;  %v352_v47 = vld [vmem:[%s2267_s7 + $0x70] sm:$0xff]  ;;  %v355_v48 = vld [vmem:[%s2267_s7 + $0x88] sm:$0xff]  ;;  %v354_v49 = vld [vmem:[%s2267_s7 + $0x80] sm:$0xff] }
  0x7c   : > { %1427 = vmatprep.subr.mxu0 %v2340_v17  ;;  %v357_v50 = vld [vmem:[%s2267_s7 + $0x98] sm:$0xff]  ;;  %v356_v51 = vld [vmem:[%s2267_s7 + $0x90] sm:$0xff]  ;;  %v359_v52 = vld [vmem:[%s2267_s7 + $0xa8] sm:$0xff] }
  0x7d   : > { %1428 = vmatpush3.msra.mxu0 %v2344_v18  ;;  %1575 = vmatpush3.xpose.msra.mxu1 %v2315_v9  ;;  %v358_v53 = vld [vmem:[%s2267_s7 + $0xa0] sm:$0xff]  ;;  %v361_v54 = vld [vmem:[%s2267_s7 + $0xb8] sm:$0xff]  ;;  %v360_v55 = vld [vmem:[%s2267_s7 + $0xb0] sm:$0xff] }
  0x7e   : > { %1429 = vmatprep.subr.mxu0 %v2348_v19  ;;  %1560 = vmatprep.subr.mxu1 %v2319_v10  ;;  %v363_v56 = vld [vmem:[%s2267_s7 + $0xc8] sm:$0xff]  ;;  %v362_v57 = vld [vmem:[%s2267_s7 + $0xc0] sm:$0xff]  ;;  %v365_v58 = vld [vmem:[%s2267_s7 + $0xd8] sm:$0xff] }
  0x7f   : > { %1430 = vmatpush3.msra.mxu0 %v2351_v20  ;;  %v364_v59 = vld [vmem:[%s2267_s7 + $0xd0] sm:$0xff]  ;;  %v367_v60 = vld [vmem:[%s2267_s7 + $0xe8] sm:$0xff]  ;;  %v366_v61 = vld [vmem:[%s2267_s7 + $0xe0] sm:$0xff] }
  0x80   : > { %1431 = vmatprep.subr.mxu0 %v2354_v21  ;;  %v369_v62 = vld [vmem:[%s2267_s7 + $0xf8] sm:$0xff]  ;;  %v368_v63 = vld [vmem:[%s2267_s7 + $0xf0] sm:$0xff]  ;;  %s1944_s7 = scalar_lea.vmem %s1943_s10, 4096 }
  0x81   : > { %1432 = vmatpush3.msra.mxu0 %v2358_v22  ;;  %1576 = vmatpush3.xpose.msra.mxu1 %v2322_v11  ;;  %p1946_p2 = scmp.lt.s32.totalorder %s1944_s7, %s1938_s26 }
  0x82   : > { %1433 = vmatprep.subr.mxu0 %v2362_v23  ;;  %1561 = vmatprep.subr.mxu1 %v2325_v12 }
  0x83   : > { %1434 = vmatpush3.msra.mxu0 %v2365_v24  ;;  %p1947_p4 = por %p1946_p2, %p1945_p5 }
  0x84   : > { %1435 = vmatprep.subr.mxu0 %v2368_v25 }
  0x85   : > { %1436 = vmatpush3.msra.mxu0 %v2372_v26  ;;  %1577 = vmatpush3.xpose.msra.mxu1 %v2330_v14  ;;  %p1948_p9 = pnand %p1947_p4, %p1941_p10 }
  0x86   : > { %1437 = vmatprep.subr.mxu0 %v2376_v27  ;;  %1562 = vmatprep.subr.mxu1 %v2333_v15 }
  0x87   : > { %1438 = vmatpush3.msra.mxu0 %v2379_v28 }
  0x88   : > { %1439 = vmatprep.subr.mxu0 %v2382_v29 }
  0x89   : > { %1440 = vmatpush3.msra.mxu0 %v2386_v30  ;;  %1578 = vmatpush3.xpose.msra.mxu1 %v2337_v16 }
  0x8a   : > { %1441 = vmatprep.subr.mxu0 %v2390_v31  ;;  %1563 = vmatprep.subr.mxu1 %v2340_v17 }
  0x8b   : > { %1442 = vmatpush3.msra.mxu0 %v2393_v32 }
  0x8c   : > { %474 = vmatmul.mubr.f32.vlgmr.msra.gmra.mxu0 %v338_v33  ;;  %1491 = vmatprep.subr.mxu0 %v2286_v0 }
  0x8d   : > { %478 = vmatprep.mubr.f32.mxu0 %v341_v34  ;;  %1492 = vmatpush3.xpose.msra.mxu0 %v2288_v1  ;;  %v2481_v1 = vld [vmem:[%s2742_s2] ss:$0 sm:$0xff] }
  0x8e   : > { %1493 = vmatprep.subr.mxu0 %v2290_v2  ;;  %1579 = vmatpush3.xpose.msra.mxu1 %v2344_v18 }
  0x8f   : > { %1564 = vmatprep.subr.mxu1 %v2348_v19 }
  0x90   : > { %479 = vmatmul.mubr.f32.gmra.mxu0 %v340_v35 }
  0x91   : > { %483 = vmatprep.mubr.f32.mxu0 %v343_v36  ;;  %1494 = vmatpush3.xpose.msra.mxu0 %v2293_v3 }
  0x92   : > { %1495 = vmatprep.subr.mxu0 %v2297_v4  ;;  %1580 = vmatpush3.xpose.msra.mxu1 %v2351_v20 }
  0x93   : > { %1565 = vmatprep.subr.mxu1 %v2354_v21 }
  0x94   : > { %484 = vmatmul.mubr.f32.gmra.mxu0 %v342_v37 }
  0x95   : > { %488 = vmatprep.mubr.f32.mxu0 %v345_v38  ;;  %1496 = vmatpush3.xpose.msra.mxu0 %v2301_v5 }
  0x96   : > { %1497 = vmatprep.subr.mxu0 %v2305_v6  ;;  %1581 = vmatpush3.xpose.msra.mxu1 %v2358_v22 }
  0x97   : > { %1566 = vmatprep.subr.mxu1 %v2362_v23 }
  0x98   : > { %489 = vmatmul.mubr.f32.gmra.mxu0 %v344_v39 }
  0x99   : > { %493 = vmatprep.mubr.f32.mxu0 %v347_v40  ;;  %1498 = vmatpush3.xpose.msra.mxu0 %v2308_v7 }
  0x9a   : > { %1499 = vmatprep.subr.mxu0 %v2311_v8  ;;  %1582 = vmatpush3.xpose.msra.mxu1 %v2365_v24 }
  0x9b   : > { %1567 = vmatprep.subr.mxu1 %v2368_v25 }
  0x9c   : > { %494 = vmatmul.mubr.f32.gmra.mxu0 %v346_v41 }
  0x9d   : > { %498 = vmatprep.mubr.f32.mxu0 %v349_v42  ;;  %1500 = vmatpush3.xpose.msra.mxu0 %v2315_v9 }
  0x9e   : > { %1501 = vmatprep.subr.mxu0 %v2319_v10  ;;  %1583 = vmatpush3.xpose.msra.mxu1 %v2372_v26 }
  0x9f   : > { %1568 = vmatprep.subr.mxu1 %v2376_v27 }
  0xa0   : > { %499 = vmatmul.mubr.f32.gmra.mxu0 %v348_v43 }
  0xa1   : > { %503 = vmatprep.mubr.f32.mxu0 %v351_v44  ;;  %1502 = vmatpush3.xpose.msra.mxu0 %v2322_v11 }
  0xa2   : > { %1503 = vmatprep.subr.mxu0 %v2325_v12  ;;  %1584 = vmatpush3.xpose.msra.mxu1 %v2379_v28 }
  0xa3   : > { %1569 = vmatprep.subr.mxu1 %v2382_v29 }
  0xa4   : > { %504 = vmatmul.mubr.f32.gmra.mxu0 %v350_v45 }
  0xa5   : > { %508 = vmatprep.mubr.f32.mxu0 %v353_v46  ;;  %1504 = vmatpush3.xpose.msra.mxu0 %v2330_v14 }
  0xa6   : > { %1505 = vmatprep.subr.mxu0 %v2333_v15  ;;  %1585 = vmatpush3.xpose.msra.mxu1 %v2386_v30 }
  0xa7   : > { %1570 = vmatprep.subr.mxu1 %v2390_v31 }
  0xa8   : > { %509 = vmatmul.mubr.f32.gmra.mxu0 %v352_v47 }
  0xa9   : > { %513 = vmatprep.mubr.f32.mxu0 %v355_v48  ;;  %1506 = vmatpush3.xpose.msra.mxu0 %v2337_v16 }
  0xaa   : > { %1507 = vmatprep.subr.mxu0 %v2340_v17  ;;  %1586 = vmatpush3.xpose.msra.mxu1 %v2393_v32 }
  0xac   : > { %514 = vmatmul.mubr.f32.gmra.mxu0 %v354_v49 }
  0xad   : > { %518 = vmatprep.mubr.f32.mxu0 %v357_v50  ;;  %1508 = vmatpush3.xpose.msra.mxu0 %v2344_v18 }
  0xae   : > { %1509 = vmatprep.subr.mxu0 %v2348_v19 }
  0xb0   : > { %519 = vmatmul.mubr.f32.gmra.mxu0 %v356_v51 }
  0xb1   : > { %523 = vmatprep.mubr.f32.mxu0 %v359_v52  ;;  %1510 = vmatpush3.xpose.msra.mxu0 %v2351_v20 }
  0xb2   : > { %1511 = vmatprep.subr.mxu0 %v2354_v21 }
  0xb4   : > { %524 = vmatmul.mubr.f32.gmra.mxu0 %v358_v53  ;;  %v650_v53 = vld [vmem:[%s2280_s27] sm:$0xff] }
  0xb5   : > { %528 = vmatprep.mubr.f32.mxu0 %v361_v54  ;;  %1512 = vmatpush3.xpose.msra.mxu0 %v2358_v22 }
  0xb6   : > { %1513 = vmatprep.subr.mxu0 %v2362_v23 }
  0xb8   : > { %529 = vmatmul.mubr.f32.gmra.mxu0 %v360_v55 }
  0xb9   : > { %533 = vmatprep.mubr.f32.mxu0 %v363_v56  ;;  %1514 = vmatpush3.xpose.msra.mxu0 %v2365_v24 }
  0xba   : > { %1515 = vmatprep.subr.mxu0 %v2368_v25 }
  0xbc   : > { %534 = vmatmul.mubr.f32.gmra.mxu0 %v362_v57 }
  0xbd   : > { %538 = vmatprep.mubr.f32.mxu0 %v365_v58  ;;  %1516 = vmatpush3.xpose.msra.mxu0 %v2372_v26 }
  0xbe   : > { %1517 = vmatprep.subr.mxu0 %v2376_v27 }
  0xc0   : > { %539 = vmatmul.mubr.f32.gmra.mxu0 %v364_v59 }
  0xc1   : > { %543 = vmatprep.mubr.f32.mxu0 %v367_v60  ;;  %1518 = vmatpush3.xpose.msra.mxu0 %v2379_v28 }
  0xc2   : > { %1519 = vmatprep.subr.mxu0 %v2382_v29 }
  0xc4   : > { %544 = vmatmul.mubr.f32.gmra.mxu0 %v366_v61 }
  0xc5   : > { %548 = vmatprep.mubr.f32.mxu0 %v369_v62  ;;  %1520 = vmatpush3.xpose.msra.mxu0 %v2386_v30  ;;  %v2049_v62 = vmov 0.0  }
  0xc6   : > { %1521 = vmatprep.subr.mxu0 %v2390_v31 }
  0xc8   : > { %549 = vmatmul.mubr.f32.gmra.mxu0 %v368_v63 }
  0xc9   : > { %1522 = vmatpush3.xpose.msra.mxu0 %v2393_v32 }
 0x14c   : > { %v1443_v0 = vpop.f32.mrf.mxu0 }
 0x14e   : > { %v1444_v2 = vpop.f32.mrf.mxu0 }
 0x14f   : > { %v1445_v3 = vadd.f32 %v1444_v2, %v1443_v0  ;;  %v2050_v0 = vmov 1.0   ;;  %v651_v2 = vld [vmem:[%s2280_s27 + $0x8] sm:$0xff] }
 0x150   : > { %v1446_v4 = vpop.f32.mrf.mxu0 }
 0x151   : > { %v476_v5 = vadd.f32 %v1445_v3, %v2481_v1 }
 0x152   : > { %v1447_v6 = vpop.f32.mrf.mxu0 }
 0x153   : > { %v1316_v7 = vmul.f32 -1.442695, %v476_v5  ;;  %v1448_v8 = vadd.f32 %v1447_v6, %v1446_v4 }
 0x154   : > { %v1449_v9 = vpop.f32.mrf.mxu0 }
 0x155   : > { %1664 = vpow2.f32 %v1316_v7  ;;  %v481_v10 = vadd.f32 %v1448_v8, %v2481_v1 }
 0x156   : > { %v1450_v11 = vpop.f32.mrf.mxu0 }
 0x157   : > { %v1317_v12 = vmul.f32 -1.442695, %v481_v10  ;;  %v1451_v13 = vadd.f32 %v1450_v11, %v1449_v9 }
 0x158   : > { %v1452_v14 = vpop.f32.mrf.mxu0 }
 0x159   : > { %1666 = vpow2.f32 %v1317_v12  ;;  %v486_v15 = vadd.f32 %v1451_v13, %v2481_v1  ;;  %v652_v12 = vld [vmem:[%s2280_s27 + $0x10] sm:$0xff] }
 0x15a   : > { %v1453_v16 = vpop.f32.mrf.mxu0 }
 0x15b   : > { %v1318_v17 = vmul.f32 -1.442695, %v486_v15  ;;  %v1454_v18 = vadd.f32 %v1453_v16, %v1452_v14 }
 0x15c   : > { %v1455_v19 = vpop.f32.mrf.mxu0 }
 0x15d   : > { %1668 = vpow2.f32 %v1318_v17  ;;  %v491_v20 = vadd.f32 %v1454_v18, %v2481_v1 }
 0x15e   : > { %v1456_v21 = vpop.f32.mrf.mxu0 }
 0x15f   : > { %v1319_v22 = vmul.f32 -1.442695, %v491_v20  ;;  %v1457_v23 = vadd.f32 %v1456_v21, %v1455_v19 }
 0x160   : > { %v1458_v24 = vpop.f32.mrf.mxu0 }
 0x161   : > { %1670 = vpow2.f32 %v1319_v22  ;;  %v496_v25 = vadd.f32 %v1457_v23, %v2481_v1  ;;  %v653_v22 = vld [vmem:[%s2280_s27 + $0x18] sm:$0xff] }
 0x162   : > { %v1665_v26 = vpop.eup %1664  ;;  %v1459_v27 = vpop.f32.mrf.mxu0 }
 0x163   : > { %v602_v28 = vadd.f32 1.0, %v1665_v26  ;;  %v1320_v29 = vmul.f32 -1.442695, %v496_v25  ;;  %v1460_v30 = vadd.f32 %v1459_v27, %v1458_v24 }
 0x164   : > { %v1461_v31 = vpop.f32.mrf.mxu0 }
 0x165   : > { %1672 = vrcp.f32 %v602_v28  ;;  %v501_v32 = vadd.f32 %v1460_v30, %v2481_v1 }
 0x166   : > { %v1667_v33 = vpop.eup %1666  ;;  %1674 = vpow2.f32 %v1320_v29  ;;  %v1462_v34 = vpop.f32.mrf.mxu0 }
 0x167   : > { %v603_v35 = vadd.f32 1.0, %v1667_v33  ;;  %v1321_v36 = vmul.f32 -1.442695, %v501_v32  ;;  %v1463_v37 = vadd.f32 %v1462_v34, %v1461_v31  ;;  %v654_v33 = vld [vmem:[%s2280_s27 + $0x20] sm:$0xff] }
 0x168   : > { %v1464_v38 = vpop.f32.mrf.mxu0 }
 0x169   : > { %1676 = vrcp.f32 %v603_v35  ;;  %v506_v39 = vadd.f32 %v1463_v37, %v2481_v1 }
 0x16a   : > { %v1669_v40 = vpop.eup %1668  ;;  %1678 = vpow2.f32 %v1321_v36  ;;  %v1465_v41 = vpop.f32.mrf.mxu0 }
 0x16b   : > { %v604_v42 = vadd.f32 1.0, %v1669_v40  ;;  %v1322_v43 = vmul.f32 -1.442695, %v506_v39  ;;  %v1466_v44 = vadd.f32 %v1465_v41, %v1464_v38 }
 0x16c   : > { %v1467_v45 = vpop.f32.mrf.mxu0 }
 0x16d   : > { %1680 = vrcp.f32 %v604_v42  ;;  %v511_v46 = vadd.f32 %v1466_v44, %v2481_v1 }
 0x16e   : > { %v1671_v47 = vpop.eup %1670  ;;  %1682 = vpow2.f32 %v1322_v43  ;;  %v1468_v48 = vpop.f32.mrf.mxu0  ;;  %v655_v43 = vld [vmem:[%s2280_s27 + $0x28] sm:$0xff] }
 0x16f   : > { %v605_v49 = vadd.f32 1.0, %v1671_v47  ;;  %v1323_v50 = vmul.f32 -1.442695, %v511_v46  ;;  %v1469_v51 = vadd.f32 %v1468_v48, %v1467_v45 }
 0x170   : > { %v1470_v52 = vpop.f32.mrf.mxu0 }
 0x171   : > { %1684 = vrcp.f32 %v605_v49  ;;  %v516_v54 = vadd.f32 %v1469_v51, %v2481_v1 }
 0x172   : > { %v1673_v55 = vpop.eup %1672  ;;  %1686 = vpow2.f32 %v1323_v50  ;;  %v1471_v56 = vpop.f32.mrf.mxu0 }
 0x173   : > { %v1675_v57 = vpop.eup %1674  ;;  %v1324_v58 = vmul.f32 -1.442695, %v516_v54  ;;  %v1472_v59 = vadd.f32 %v1471_v56, %v1470_v52  ;;  %vm666_vm0 = vcmp.lt.f32.partialorder %v650_v53, %v1673_v55  ;;  %v656_v53 = vld [vmem:[%s2280_s27 + $0x30] sm:$0xff] }
 0x174   : > { %v606_v60 = vadd.f32 1.0, %v1675_v57  ;;  %v1473_v61 = vpop.f32.mrf.mxu0  ;;  %v1332_v63 = vsel %vm666_vm0, 1.0, %v2049_v62  ;;  %1523 = vmatprep.mubr.msk.f32.mxu0 %vm666_vm0, %v2050_v0 }
 0x175   : > { %1688 = vpow2.f32 %v1324_v58  ;;  %v521_v3 = vadd.f32 %v1472_v59, %v2481_v1  ;;  %1111 = vst [vmem:[%s2499_s8] sm:$0xff] %v1332_v63  ;;  %1524 = vmatmul.mubr.msk.f32.vlgmr.msra.gmra.mxu0 %vm666_vm0, %v2050_v0  ;;  %v657_v63 = vld [vmem:[%s2280_s27 + $0x38] sm:$0xff] }
 0x176   : > { %v1677_v4 = vpop.eup %1676  ;;  %1690 = vrcp.f32 %v606_v60  ;;  %v1474_v5 = vpop.f32.mrf.mxu0 }
 0x177   : > { %v1679_v6 = vpop.eup %1678  ;;  %v1325_v7 = vmul.f32 -1.442695, %v521_v3  ;;  %v1475_v8 = vadd.f32 %v1474_v5, %v1473_v61  ;;  %vm667_vm1 = vcmp.lt.f32.partialorder %v651_v2, %v1677_v4 }
 0x178   : > { %v607_v9 = vadd.f32 1.0, %v1679_v6  ;;  %v1476_v10 = vpop.f32.mrf.mxu0  ;;  %v1333_v11 = vsel %vm667_vm1, 1.0, %v2049_v62  ;;  %1525 = vmatprep.mubr.msk.f32.mxu0 %vm667_vm1, %v2050_v0  ;;  %v658_v6 = vld [vmem:[%s2280_s27 + $0x40] sm:$0xff] }
 0x179   : > { %1692 = vpow2.f32 %v1325_v7  ;;  %v526_v13 = vadd.f32 %v1475_v8, %v2481_v1  ;;  %1112 = vst [vmem:[%s2499_s8 + $0x8] sm:$0xff] %v1333_v11  ;;  %1526 = vmatmul.mubr.msk.f32.gmra.mxu0 %vm667_vm1, %v2050_v0  ;;  %v659_v11 = vld [vmem:[%s2280_s27 + $0x48] sm:$0xff] }
 0x17a   : > { %v1681_v14 = vpop.eup %1680  ;;  %1694 = vrcp.f32 %v607_v9  ;;  %v1477_v15 = vpop.f32.mrf.mxu0 }
 0x17b   : > { %v1683_v16 = vpop.eup %1682  ;;  %v1326_v17 = vmul.f32 -1.442695, %v526_v13  ;;  %v1478_v18 = vadd.f32 %v1477_v15, %v1476_v10  ;;  %vm668_vm2 = vcmp.lt.f32.partialorder %v652_v12, %v1681_v14 }
 0x17c   : > { %v608_v19 = vadd.f32 1.0, %v1683_v16  ;;  %v1479_v20 = vpop.f32.mrf.mxu0  ;;  %v1334_v21 = vsel %vm668_vm2, 1.0, %v2049_v62  ;;  %1527 = vmatprep.mubr.msk.f32.mxu0 %vm668_vm2, %v2050_v0  ;;  %v660_v16 = vld [vmem:[%s2280_s27 + $0x50] sm:$0xff] }
 0x17d   : > { %1696 = vpow2.f32 %v1326_v17  ;;  %v531_v23 = vadd.f32 %v1478_v18, %v2481_v1  ;;  %1113 = vst [vmem:[%s2499_s8 + $0x10] sm:$0xff] %v1334_v21  ;;  %1528 = vmatmul.mubr.msk.f32.gmra.mxu0 %vm668_vm2, %v2050_v0  ;;  %v661_v21 = vld [vmem:[%s2280_s27 + $0x58] sm:$0xff] }
 0x17e   : > { %v1685_v24 = vpop.eup %1684  ;;  %1698 = vrcp.f32 %v608_v19  ;;  %v1480_v25 = vpop.f32.mrf.mxu0 }
 0x17f   : > { %v1687_v26 = vpop.eup %1686  ;;  %v1327_v27 = vmul.f32 -1.442695, %v531_v23  ;;  %v1481_v28 = vadd.f32 %v1480_v25, %v1479_v20  ;;  %vm669_vm3 = vcmp.lt.f32.partialorder %v653_v22, %v1685_v24 }
 0x180   : > { %v609_v29 = vadd.f32 1.0, %v1687_v26  ;;  %v1482_v30 = vpop.f32.mrf.mxu0  ;;  %v1335_v31 = vsel %vm669_vm3, 1.0, %v2049_v62  ;;  %1529 = vmatprep.mubr.msk.f32.mxu0 %vm669_vm3, %v2050_v0  ;;  %v662_v26 = vld [vmem:[%s2280_s27 + $0x60] sm:$0xff] }
 0x181   : > { %1700 = vpow2.f32 %v1327_v27  ;;  %v536_v32 = vadd.f32 %v1481_v28, %v2481_v1  ;;  %1114 = vst [vmem:[%s2499_s8 + $0x18] sm:$0xff] %v1335_v31  ;;  %1530 = vmatmul.mubr.msk.f32.gmra.mxu0 %vm669_vm3, %v2050_v0 }
 0x182   : > { %v1689_v34 = vpop.eup %1688  ;;  %1702 = vrcp.f32 %v609_v29  ;;  %v1483_v35 = vpop.f32.mrf.mxu0  ;;  %v663_v29 = vld [vmem:[%s2280_s27 + $0x68] sm:$0xff] }
 0x183   : > { %v1691_v36 = vpop.eup %1690  ;;  %v610_v37 = vadd.f32 1.0, %v1689_v34  ;;  %v1328_v38 = vmul.f32 -1.442695, %v536_v32  ;;  %v1484_v39 = vadd.f32 %v1483_v35, %v1482_v30  ;;  %v664_v32 = vld [vmem:[%s2280_s27 + $0x70] sm:$0xff]  ;;  %v665_v35 = vld [vmem:[%s2280_s27 + $0x78] sm:$0xff] }
 0x184   : > { %v1485_v40 = vpop.f32.mrf.mxu0  ;;  %vm670_vm4 = vcmp.lt.f32.partialorder %v654_v33, %v1691_v36 }
 0x185   : > { %1704 = vrcp.f32 %v610_v37  ;;  %v541_v41 = vadd.f32 %v1484_v39, %v2481_v1  ;;  %v1336_v42 = vsel %vm670_vm4, 1.0, %v2049_v62  ;;  %1531 = vmatprep.mubr.msk.f32.mxu1 %vm670_vm4, %v2050_v0 }
 0x186   : > { %v1693_v44 = vpop.eup %1692  ;;  %1706 = vpow2.f32 %v1328_v38  ;;  %1115 = vst [vmem:[%s2499_s8 + $0x20] sm:$0xff] %v1336_v42  ;;  %1532 = vmatmul.mubr.msk.f32.vlgmr.msra.gmra.mxu1 %vm670_vm4, %v2050_v0  ;;  %v1486_v45 = vpop.f32.mrf.mxu0 }
 0x187   : > { %v1695_v46 = vpop.eup %1694  ;;  %v611_v47 = vadd.f32 1.0, %v1693_v44  ;;  %v1329_v48 = vmul.f32 -1.442695, %v541_v41  ;;  %v1487_v49 = vadd.f32 %v1486_v45, %v1485_v40 }
 0x188   : > { %v1488_v50 = vpop.f32.mrf.mxu0  ;;  %vm671_vm5 = vcmp.lt.f32.partialorder %v655_v43, %v1695_v46 }
 0x189   : > { %1708 = vrcp.f32 %v611_v47  ;;  %v546_v51 = vadd.f32 %v1487_v49, %v2481_v1  ;;  %v1337_v52 = vsel %vm671_vm5, 1.0, %v2049_v62  ;;  %1533 = vmatprep.mubr.msk.f32.mxu1 %vm671_vm5, %v2050_v0 }
 0x18a   : > { %v1697_v54 = vpop.eup %1696  ;;  %1710 = vpow2.f32 %v1329_v48  ;;  %1116 = vst [vmem:[%s2499_s8 + $0x28] sm:$0xff] %v1337_v52  ;;  %1534 = vmatmul.mubr.msk.f32.gmra.mxu1 %vm671_vm5, %v2050_v0  ;;  %v1489_v55 = vpop.f32.mrf.mxu0 }
 0x18b   : > { %v1699_v56 = vpop.eup %1698  ;;  %v612_v57 = vadd.f32 1.0, %v1697_v54  ;;  %v1330_v58 = vmul.f32 -1.442695, %v546_v51  ;;  %v1490_v59 = vadd.f32 %v1489_v55, %v1488_v50 }
 0x18c   : > { %vm672_vm6 = vcmp.lt.f32.partialorder %v656_v53, %v1699_v56 }
 0x18d   : > { %1712 = vrcp.f32 %v612_v57  ;;  %v551_v60 = vadd.f32 %v1490_v59, %v2481_v1  ;;  %v1338_v61 = vsel %vm672_vm6, 1.0, %v2049_v62  ;;  %1535 = vmatprep.mubr.msk.f32.mxu1 %vm672_vm6, %v2050_v0 }
 0x18e   : > { %v1701_v2 = vpop.eup %1700  ;;  %1714 = vpow2.f32 %v1330_v58  ;;  %1117 = vst [vmem:[%s2499_s8 + $0x30] sm:$0xff] %v1338_v61  ;;  %1536 = vmatmul.mubr.msk.f32.gmra.mxu1 %vm672_vm6, %v2050_v0 }
 0x18f   : > { %v1703_v3 = vpop.eup %1702  ;;  %v613_v4 = vadd.f32 1.0, %v1701_v2  ;;  %v1331_v5 = vmul.f32 -1.442695, %v551_v60 }
 0x190   : > { %vm673_vm7 = vcmp.lt.f32.partialorder %v657_v63, %v1703_v3 }
 0x191   : > { %1716 = vrcp.f32 %v613_v4  ;;  %v1339_v1 = vsel %vm673_vm7, 1.0, %v2049_v62  ;;  %1537 = vmatprep.mubr.msk.f32.mxu1 %vm673_vm7, %v2050_v0 }
 0x192   : > { %v1705_v7 = vpop.eup %1704  ;;  %1718 = vpow2.f32 %v1331_v5  ;;  %1118 = vst [vmem:[%s2499_s8 + $0x38] sm:$0xff] %v1339_v1  ;;  %1538 = vmatmul.mubr.msk.f32.gmra.mxu1 %vm673_vm7, %v2050_v0 }
 0x193   : > { %v1707_v8 = vpop.eup %1706  ;;  %vm674_vm8 = vcmp.lt.f32.partialorder %v658_v6, %v1705_v7 }
 0x194   : > { %v614_v9 = vadd.f32 1.0, %v1707_v8  ;;  %v1340_v10 = vsel %vm674_vm8, 1.0, %v2049_v62  ;;  %1539 = vmatprep.mubr.msk.f32.mxu1 %vm674_vm8, %v2050_v0 }
 0x195   : > { %1119 = vst [vmem:[%s2499_s8 + $0x40] sm:$0xff] %v1340_v10 }
 0x196   : > { %v1709_v12 = vpop.eup %1708  ;;  %1720 = vrcp.f32 %v614_v9  ;;  %1540 = vmatmul.mubr.msk.f32.gmra.mxu1 %vm674_vm8, %v2050_v0 }
 0x197   : > { %v1711_v13 = vpop.eup %1710  ;;  %vm675_vm9 = vcmp.lt.f32.partialorder %v659_v11, %v1709_v12 }
 0x198   : > { %v615_v14 = vadd.f32 1.0, %v1711_v13  ;;  %v1341_v15 = vsel %vm675_vm9, 1.0, %v2049_v62  ;;  %1541 = vmatprep.mubr.msk.f32.mxu1 %vm675_vm9, %v2050_v0 }
 0x199   : > { %1120 = vst [vmem:[%s2499_s8 + $0x48] sm:$0xff] %v1341_v15 }
 0x19a   : > { %v1713_v17 = vpop.eup %1712  ;;  %1722 = vrcp.f32 %v615_v14  ;;  %1542 = vmatmul.mubr.msk.f32.gmra.mxu1 %vm675_vm9, %v2050_v0 }
 0x19b   : > { %v1715_v18 = vpop.eup %1714  ;;  %vm676_vm10 = vcmp.lt.f32.partialorder %v660_v16, %v1713_v17 }
 0x19c   : > { %v616_v19 = vadd.f32 1.0, %v1715_v18  ;;  %v1342_v20 = vsel %vm676_vm10, 1.0, %v2049_v62  ;;  %1543 = vmatprep.mubr.msk.f32.mxu1 %vm676_vm10, %v2050_v0 }
 0x19d   : > { %1121 = vst [vmem:[%s2499_s8 + $0x50] sm:$0xff] %v1342_v20 }
 0x19e   : > { %v1717_v22 = vpop.eup %1716  ;;  %1724 = vrcp.f32 %v616_v19  ;;  %1544 = vmatmul.mubr.msk.f32.gmra.mxu1 %vm676_vm10, %v2050_v0 }
 0x19f   : > { %v1719_v23 = vpop.eup %1718  ;;  %vm677_vm11 = vcmp.lt.f32.partialorder %v661_v21, %v1717_v22 }
 0x1a0   : > { %v617_v24 = vadd.f32 1.0, %v1719_v23  ;;  %v1343_v25 = vsel %vm677_vm11, 1.0, %v2049_v62  ;;  %1545 = vmatprep.mubr.msk.f32.mxu1 %vm677_vm11, %v2050_v0 }
 0x1a1   : > { %1122 = vst [vmem:[%s2499_s8 + $0x58] sm:$0xff] %v1343_v25 }
 0x1a2   : > { %1726 = vrcp.f32 %v617_v24  ;;  %1546 = vmatmul.mubr.msk.f32.gmra.mxu1 %vm677_vm11, %v2050_v0 }
 0x1a3   : > { %v1721_v27 = vpop.eup %1720 }
 0x1a4   : > { %vm678_vm12 = vcmp.lt.f32.partialorder %v662_v26, %v1721_v27 }
 0x1a5   : > { %v1344_v28 = vsel %vm678_vm12, 1.0, %v2049_v62  ;;  %1547 = vmatprep.mubr.msk.f32.mxu1 %vm678_vm12, %v2050_v0 }
 0x1a6   : > { %1123 = vst [vmem:[%s2499_s8 + $0x60] sm:$0xff] %v1344_v28  ;;  %1548 = vmatmul.mubr.msk.f32.gmra.mxu1 %vm678_vm12, %v2050_v0 }
 0x1a7   : > { %v1723_v30 = vpop.eup %1722 }
 0x1a8   : > { %vm679_vm13 = vcmp.lt.f32.partialorder %v663_v29, %v1723_v30 }
 0x1a9   : > { %v1345_v31 = vsel %vm679_vm13, 1.0, %v2049_v62  ;;  %1549 = vmatprep.mubr.msk.f32.mxu1 %vm679_vm13, %v2050_v0 }
 0x1aa   : > { %1124 = vst [vmem:[%s2499_s8 + $0x68] sm:$0xff] %v1345_v31  ;;  %1550 = vmatmul.mubr.msk.f32.gmra.mxu1 %vm679_vm13, %v2050_v0 }
 0x1ab   : > { %v1725_v33 = vpop.eup %1724 }
 0x1ac   : > { %vm680_vm14 = vcmp.lt.f32.partialorder %v664_v32, %v1725_v33 }
 0x1ad   : > { %v1346_v34 = vsel %vm680_vm14, 1.0, %v2049_v62  ;;  %1551 = vmatprep.mubr.msk.f32.mxu1 %vm680_vm14, %v2050_v0 }
 0x1ae   : > { %1125 = vst [vmem:[%s2499_s8 + $0x70] sm:$0xff] %v1346_v34  ;;  %1552 = vmatmul.mubr.msk.f32.gmra.mxu1 %vm680_vm14, %v2050_v0 }
 0x1af   : > { %v1727_v36 = vpop.eup %1726 }
 0x1b0   : > { %vm681_vm15 = vcmp.lt.f32.partialorder %v665_v35, %v1727_v36 }
 0x1b1   : > { %v1347_v37 = vsel %vm681_vm15, 1.0, %v2049_v62  ;;  %1553 = vmatprep.mubr.msk.f32.mxu1 %vm681_vm15, %v2050_v0 }
 0x1b2   : > { %1126 = vst [vmem:[%s2499_s8 + $0x78] sm:$0xff] %v1347_v37  ;;  %1554 = vmatmul.mubr.msk.f32.gmra.mxu1 %vm681_vm15, %v2050_v0 }
 0x1b3   : > { %1951 = shalt.err (!%p1948_p9)
}
 0x1b4   : > { %s1952_s20 = scalar_lea.hbm %s2588_s12, 2048  ;;  %s1956_s29 = scalar_lea.hbm %s2746_s6, 4096 }
 0x1b5   : > { %p1953_p13 = scmp.ne.s32.totalorder %s2588_s12, %s1952_s20  ;;  %p1957_p11 = scmp.lt.s32.totalorder %s2588_s12, %s2746_s6 }
 0x1b6   : > { %p1958_p0 = scmp.lt.s32.totalorder %s1956_s29, %s1952_s20 }
 0x1b7   : > { %p1954_p7 = pnand %p1953_p13, %p2764_p1 }
 0x1b8   : > { %p1959_p3 = por %p1958_p0, %p1957_p11 }
 0x1b9   : > { %p1955_p6 = pneg %p1954_p7 }
 0x1bb   : > { %p1960_p12 = pnand %p1959_p3, %p1955_p6 }
 0x1bd   : > { %1963 = shalt.err (!%p1960_p12)
}
 0x1be   : > { %s2052_s0 = smov 128   ;;  %s2053_s28 = smov 8   ;;  %v716_v62 = vlaneseq  ;;  %v714_v39 = vld [vmem:[%s2743_s3] sm:$0x3] }
 0x1bf   : > { %1596 = dma.vmem_to_hbm [thread:$0]  (%p2764_p1), %s2590_s16, 2048, %s2588_s12, %s1133_s19, %s2052_s0, %s2052_s0, %s2053_s28  }
 0x1c0   : > { %v717_v0 = vshrl.u32 %v716_v62, 7  ;;  %s2641_s16 = scalar_lea.vmem [#allocation8], %s1310_s17  ;;  %s1409_s17 = sshll.u32 %s2175_s18, 12 }
 0x1c1   : > { %s1147_s12 = sshll.u32 %s2641_s16, 4  ;;  %s2693_s7 = scalar_lea.hbm %s2745_s5, %s1409_s17  ;;  %s2695_s12 = int_to_ptr.vmem [resolvable:$true] %s1147_s12 }
 0x1c2   : > { %v718_v38 = vsub.s32 0, %v717_v0  ;;  %v722_v40 = vsub.s32 1, %v717_v0  ;;  %s1128_s20 = scalar_lea.sflag [#allocation4], %s2262_s15  ;;  %s1964_s27 = scalar_lea.vmem %s2695_s12, 4096 }
 0x1c3   : > { %p1965_p8 = scmp.ne.s32.totalorder %s2695_s12, %s1964_s27  ;;  %s2054_s18 = smov [#allocation8]  }
 0x1c4   : > { %v2618_v41 = vrot.slane %v714_v39, %v718_v38  ;;  %v2620_v42 = vrot.slane %v714_v39, %v722_v40  ;;  %s1968_s11 = sshll.u32 %s2054_s18, 4  ;;  %s1969_s11 = int_to_ptr.vmem [resolvable:$false] %s1968_s11 }
 0x1c5   : > { %p1966_p10 = pnand %p1965_p8, %p2764_p1  ;;  %s1970_s29 = scalar_lea.vmem %s1969_s11, 8192 }
 0x1c6   : > { %p1971_p2 = scmp.lt.s32.totalorder %s2695_s12, %s1969_s11  ;;  %p1972_p4 = scmp.lt.s32.totalorder %s1970_s29, %s1964_s27 }
 0x1c7   : > { %p1967_p5 = pneg %p1966_p10 }
 0x1c8   : > { %p1973_p9 = por %p1972_p4, %p1971_p2 }
 0x1ca   : > { %p1974_p13 = pnand %p1973_p9, %p1967_p5 }
 0x235   : > { %v792_v43 = vpop.f32.mrf.mxu0 }
 0x236   : > { %v793_v44 = vadd.f32 %v792_v43, %v2618_v41 }
 0x237   : > { %v794_v45 = vpop.f32.mrf.mxu0 }
 0x238   : > { %v1364_v46 = vmul.f32 -1.442695, %v793_v44  ;;  %v795_v47 = vadd.f32 %v794_v45, %v2620_v42 }
 0x239   : > { %v798_v48 = vpop.f32.mrf.mxu0 }
 0x23a   : > { %1728 = vpow2.f32 %v1364_v46  ;;  %v1365_v49 = vmul.f32 -1.442695, %v795_v47  ;;  %v799_v50 = vadd.f32 %v798_v48, %v2618_v41 }
 0x23b   : > { %v800_v51 = vpop.f32.mrf.mxu0 }
 0x23c   : > { %1730 = vpow2.f32 %v1365_v49  ;;  %v1366_v52 = vmul.f32 -1.442695, %v799_v50  ;;  %v801_v53 = vadd.f32 %v800_v51, %v2620_v42 }
 0x23d   : > { %v804_v54 = vpop.f32.mrf.mxu0 }
 0x23e   : > { %1732 = vpow2.f32 %v1366_v52  ;;  %v1367_v55 = vmul.f32 -1.442695, %v801_v53  ;;  %v805_v56 = vadd.f32 %v804_v54, %v2618_v41 }
 0x23f   : > { %v806_v57 = vpop.f32.mrf.mxu0 }
 0x240   : > { %1734 = vpow2.f32 %v1367_v55  ;;  %v1368_v58 = vmul.f32 -1.442695, %v805_v56  ;;  %v807_v59 = vadd.f32 %v806_v57, %v2620_v42 }
 0x241   : > { %v810_v60 = vpop.f32.mrf.mxu0 }
 0x242   : > { %1736 = vpow2.f32 %v1368_v58  ;;  %v1369_v61 = vmul.f32 -1.442695, %v807_v59  ;;  %v811_v63 = vadd.f32 %v810_v60, %v2618_v41 }
 0x243   : > { %v812_v2 = vpop.f32.mrf.mxu0 }
 0x244   : > { %1738 = vpow2.f32 %v1369_v61  ;;  %v1370_v3 = vmul.f32 -1.442695, %v811_v63  ;;  %v813_v4 = vadd.f32 %v812_v2, %v2620_v42 }
 0x246   : > { %1740 = vpow2.f32 %v1370_v3  ;;  %v1371_v5 = vmul.f32 -1.442695, %v813_v4  ;;  %v816_v6 = vpop.f32.mrf.mxu1 }
 0x247   : > { %v1729_v1 = vpop.eup %1728  ;;  %v817_v7 = vadd.f32 %v816_v6, %v2618_v41 }
 0x248   : > { %v983_v8 = vadd.f32 1.0, %v1729_v1  ;;  %1742 = vpow2.f32 %v1371_v5  ;;  %v818_v9 = vpop.f32.mrf.mxu1 }
 0x249   : > { %v1731_v10 = vpop.eup %1730  ;;  %v1372_v11 = vmul.f32 -1.442695, %v817_v7  ;;  %v819_v12 = vadd.f32 %v818_v9, %v2620_v42 }
 0x24a   : > { %1744 = vrcp.f32 %v983_v8  ;;  %v984_v13 = vadd.f32 1.0, %v1731_v10  ;;  %v822_v14 = vpop.f32.mrf.mxu1 }
 0x24b   : > { %v1733_v15 = vpop.eup %1732  ;;  %1746 = vpow2.f32 %v1372_v11  ;;  %v1373_v16 = vmul.f32 -1.442695, %v819_v12  ;;  %v823_v17 = vadd.f32 %v822_v14, %v2618_v41 }
 0x24c   : > { %1748 = vrcp.f32 %v984_v13  ;;  %v985_v18 = vadd.f32 1.0, %v1733_v15  ;;  %v824_v19 = vpop.f32.mrf.mxu1 }
 0x24d   : > { %v1735_v20 = vpop.eup %1734  ;;  %1750 = vpow2.f32 %v1373_v16  ;;  %v1374_v21 = vmul.f32 -1.442695, %v823_v17  ;;  %v825_v22 = vadd.f32 %v824_v19, %v2620_v42 }
 0x24e   : > { %1752 = vrcp.f32 %v985_v18  ;;  %v986_v23 = vadd.f32 1.0, %v1735_v20  ;;  %v828_v24 = vpop.f32.mrf.mxu1 }
 0x24f   : > { %v1737_v25 = vpop.eup %1736  ;;  %1754 = vpow2.f32 %v1374_v21  ;;  %v1375_v26 = vmul.f32 -1.442695, %v825_v22  ;;  %v829_v27 = vadd.f32 %v828_v24, %v2618_v41 }
 0x250   : > { %1756 = vrcp.f32 %v986_v23  ;;  %v987_v28 = vadd.f32 1.0, %v1737_v25  ;;  %v830_v29 = vpop.f32.mrf.mxu1 }
 0x251   : > { %v1739_v30 = vpop.eup %1738  ;;  %1758 = vpow2.f32 %v1375_v26  ;;  %v1376_v31 = vmul.f32 -1.442695, %v829_v27  ;;  %v831_v32 = vadd.f32 %v830_v29, %v2620_v42 }
 0x252   : > { %1760 = vrcp.f32 %v987_v28  ;;  %v988_v33 = vadd.f32 1.0, %v1739_v30  ;;  %v834_v34 = vpop.f32.mrf.mxu1 }
 0x253   : > { %v1741_v35 = vpop.eup %1740  ;;  %1762 = vpow2.f32 %v1376_v31  ;;  %v1377_v36 = vmul.f32 -1.442695, %v831_v32  ;;  %v835_v37 = vadd.f32 %v834_v34, %v2618_v41 }
 0x254   : > { %1764 = vrcp.f32 %v988_v33  ;;  %v989_v62 = vadd.f32 1.0, %v1741_v35  ;;  %v836_v0 = vpop.f32.mrf.mxu1 }
 0x255   : > { %v1743_v38 = vpop.eup %1742  ;;  %1766 = vpow2.f32 %v1377_v36  ;;  %v1378_v39 = vmul.f32 -1.442695, %v835_v37  ;;  %v837_v40 = vadd.f32 %v836_v0, %v2620_v42 }
 0x256   : > { %1768 = vrcp.f32 %v989_v62  ;;  %v990_v43 = vadd.f32 1.0, %v1743_v38  ;;  %v840_v44 = vpop.f32.mrf.mxu1 }
 0x257   : > { %v1745_v45 = vpop.eup %1744  ;;  %1770 = vpow2.f32 %v1378_v39  ;;  %v1379_v46 = vmul.f32 -1.442695, %v837_v40  ;;  %v841_v47 = vadd.f32 %v840_v44, %v2618_v41 }
 0x258   : > { %v1747_v48 = vpop.eup %1746  ;;  %1079 = vst [vmem:[%s2641_s16] sm:$0xff] %v1745_v45  ;;  %1772 = vrcp.f32 %v990_v43  ;;  %v842_v49 = vpop.f32.mrf.mxu1 }
 0x259   : > { %v1749_v50 = vpop.eup %1748  ;;  %v991_v51 = vadd.f32 1.0, %v1747_v48  ;;  %1774 = vpow2.f32 %v1379_v46  ;;  %v1380_v52 = vmul.f32 -1.442695, %v841_v47  ;;  %v843_v53 = vadd.f32 %v842_v49, %v2620_v42 }
 0x25a   : > { %v1751_v54 = vpop.eup %1750  ;;  %1080 = vst [vmem:[%s2641_s16 + $0x8] sm:$0xff] %v1749_v50  ;;  %v846_v55 = vpop.f32.mrf.mxu1 }
 0x25b   : > { %v1753_v56 = vpop.eup %1752  ;;  %1776 = vrcp.f32 %v991_v51  ;;  %v992_v57 = vadd.f32 1.0, %v1751_v54  ;;  %v1381_v58 = vmul.f32 -1.442695, %v843_v53  ;;  %v847_v59 = vadd.f32 %v846_v55, %v2618_v41 }
 0x25c   : > { %v1755_v60 = vpop.eup %1754  ;;  %1081 = vst [vmem:[%s2641_s16 + $0x10] sm:$0xff] %v1753_v56  ;;  %1778 = vpow2.f32 %v1380_v52  ;;  %v848_v61 = vpop.f32.mrf.mxu1 }
 0x25d   : > { %v1757_v63 = vpop.eup %1756  ;;  %1780 = vrcp.f32 %v992_v57  ;;  %v993_v2 = vadd.f32 1.0, %v1755_v60  ;;  %v1382_v3 = vmul.f32 -1.442695, %v847_v59  ;;  %v849_v4 = vadd.f32 %v848_v61, %v2620_v42 }
 0x25e   : > { %v1759_v5 = vpop.eup %1758  ;;  %1082 = vst [vmem:[%s2641_s16 + $0x18] sm:$0xff] %v1757_v63  ;;  %1782 = vpow2.f32 %v1381_v58  ;;  %v852_v6 = vpop.f32.mrf.mxu1 }
 0x25f   : > { %v1761_v1 = vpop.eup %1760  ;;  %1784 = vrcp.f32 %v993_v2  ;;  %v994_v7 = vadd.f32 1.0, %v1759_v5  ;;  %v1383_v8 = vmul.f32 -1.442695, %v849_v4  ;;  %v853_v9 = vadd.f32 %v852_v6, %v2618_v41 }
 0x260   : > { %v1763_v10 = vpop.eup %1762  ;;  %1083 = vst [vmem:[%s2641_s16 + $0x20] sm:$0xff] %v1761_v1  ;;  %1786 = vpow2.f32 %v1382_v3  ;;  %v854_v11 = vpop.f32.mrf.mxu1 }
 0x261   : > { %v1765_v12 = vpop.eup %1764  ;;  %1788 = vrcp.f32 %v994_v7  ;;  %v995_v13 = vadd.f32 1.0, %v1763_v10  ;;  %v1384_v14 = vmul.f32 -1.442695, %v853_v9  ;;  %v855_v15 = vadd.f32 %v854_v11, %v2620_v42 }
 0x262   : > { %v1767_v16 = vpop.eup %1766  ;;  %1084 = vst [vmem:[%s2641_s16 + $0x28] sm:$0xff] %v1765_v12  ;;  %1790 = vpow2.f32 %v1383_v8  ;;  %v858_v17 = vpop.f32.mrf.mxu1 }
 0x263   : > { %v1769_v18 = vpop.eup %1768  ;;  %1792 = vrcp.f32 %v995_v13  ;;  %v996_v19 = vadd.f32 1.0, %v1767_v16  ;;  %v1385_v20 = vmul.f32 -1.442695, %v855_v15  ;;  %v859_v21 = vadd.f32 %v858_v17, %v2618_v41 }
 0x264   : > { %v1771_v22 = vpop.eup %1770  ;;  %1085 = vst [vmem:[%s2641_s16 + $0x30] sm:$0xff] %v1769_v18  ;;  %1794 = vpow2.f32 %v1384_v14  ;;  %v860_v23 = vpop.f32.mrf.mxu1 }
 0x265   : > { %v1773_v24 = vpop.eup %1772  ;;  %1796 = vrcp.f32 %v996_v19  ;;  %v997_v25 = vadd.f32 1.0, %v1771_v22  ;;  %v1386_v26 = vmul.f32 -1.442695, %v859_v21  ;;  %v861_v27 = vadd.f32 %v860_v23, %v2620_v42 }
 0x266   : > { %v1775_v28 = vpop.eup %1774  ;;  %1086 = vst [vmem:[%s2641_s16 + $0x38] sm:$0xff] %v1773_v24  ;;  %1798 = vpow2.f32 %v1385_v20  ;;  %v864_v29 = vpop.f32.mrf.mxu1 }
 0x267   : > { %1800 = vrcp.f32 %v997_v25  ;;  %v998_v30 = vadd.f32 1.0, %v1775_v28  ;;  %v1387_v31 = vmul.f32 -1.442695, %v861_v27  ;;  %v865_v32 = vadd.f32 %v864_v29, %v2618_v41 }
 0x268   : > { %v1777_v33 = vpop.eup %1776  ;;  %1802 = vpow2.f32 %v1386_v26  ;;  %v866_v34 = vpop.f32.mrf.mxu1 }
 0x269   : > { %v1779_v35 = vpop.eup %1778  ;;  %1087 = vst [vmem:[%s2641_s16 + $0x40] sm:$0xff] %v1777_v33  ;;  %1804 = vrcp.f32 %v998_v30  ;;  %v1388_v36 = vmul.f32 -1.442695, %v865_v32  ;;  %v867_v37 = vadd.f32 %v866_v34, %v2620_v42 }
 0x26a   : > { %v1781_v62 = vpop.eup %1780  ;;  %v999_v0 = vadd.f32 1.0, %v1779_v35  ;;  %1806 = vpow2.f32 %v1387_v31  ;;  %v870_v38 = vpop.f32.mrf.mxu1 }
 0x26b   : > { %v1783_v39 = vpop.eup %1782  ;;  %1088 = vst [vmem:[%s2641_s16 + $0x48] sm:$0xff] %v1781_v62  ;;  %1808 = vpow2.f32 %v1388_v36  ;;  %v1389_v40 = vmul.f32 -1.442695, %v867_v37  ;;  %v871_v43 = vadd.f32 %v870_v38, %v2618_v41 }
 0x26c   : > { %v1785_v44 = vpop.eup %1784  ;;  %1810 = vrcp.f32 %v999_v0  ;;  %v1000_v45 = vadd.f32 1.0, %v1783_v39  ;;  %v872_v46 = vpop.f32.mrf.mxu1 }
 0x26d   : > { %v1787_v47 = vpop.eup %1786  ;;  %1089 = vst [vmem:[%s2641_s16 + $0x50] sm:$0xff] %v1785_v44  ;;  %1812 = vpow2.f32 %v1389_v40  ;;  %v1390_v48 = vmul.f32 -1.442695, %v871_v43  ;;  %v873_v49 = vadd.f32 %v872_v46, %v2620_v42 }
 0x26e   : > { %v1789_v50 = vpop.eup %1788  ;;  %1814 = vrcp.f32 %v1000_v45  ;;  %v1001_v51 = vadd.f32 1.0, %v1787_v47  ;;  %v876_v52 = vpop.f32.mrf.mxu1 }
 0x26f   : > { %v1791_v53 = vpop.eup %1790  ;;  %1090 = vst [vmem:[%s2641_s16 + $0x58] sm:$0xff] %v1789_v50  ;;  %1816 = vpow2.f32 %v1390_v48  ;;  %v1391_v54 = vmul.f32 -1.442695, %v873_v49  ;;  %v877_v55 = vadd.f32 %v876_v52, %v2618_v41 }
 0x270   : > { %v1793_v56 = vpop.eup %1792  ;;  %1818 = vrcp.f32 %v1001_v51  ;;  %v1002_v57 = vadd.f32 1.0, %v1791_v53  ;;  %v878_v58 = vpop.f32.mrf.mxu1 }
 0x271   : > { %v1795_v59 = vpop.eup %1794  ;;  %1091 = vst [vmem:[%s2641_s16 + $0x60] sm:$0xff] %v1793_v56  ;;  %1820 = vpow2.f32 %v1391_v54  ;;  %v1392_v60 = vmul.f32 -1.442695, %v877_v55  ;;  %v879_v61 = vadd.f32 %v878_v58, %v2620_v42 }
 0x272   : > { %v1797_v63 = vpop.eup %1796  ;;  %1822 = vrcp.f32 %v1002_v57  ;;  %v1003_v2 = vadd.f32 1.0, %v1795_v59  ;;  %v882_v3 = vpop.f32.mrf.mxu1 }
 0x273   : > { %v1799_v4 = vpop.eup %1798  ;;  %1092 = vst [vmem:[%s2641_s16 + $0x68] sm:$0xff] %v1797_v63  ;;  %1824 = vpow2.f32 %v1392_v60  ;;  %v1393_v5 = vmul.f32 -1.442695, %v879_v61  ;;  %v883_v6 = vadd.f32 %v882_v3, %v2618_v41 }
 0x274   : > { %v1801_v1 = vpop.eup %1800  ;;  %1826 = vrcp.f32 %v1003_v2  ;;  %v1004_v7 = vadd.f32 1.0, %v1799_v4  ;;  %v884_v8 = vpop.f32.mrf.mxu1 }
 0x275   : > { %v1803_v9 = vpop.eup %1802  ;;  %1093 = vst [vmem:[%s2641_s16 + $0x70] sm:$0xff] %v1801_v1  ;;  %1828 = vpow2.f32 %v1393_v5  ;;  %v1394_v10 = vmul.f32 -1.442695, %v883_v6  ;;  %v885_v11 = vadd.f32 %v884_v8, %v2620_v42 }
 0x276   : > { %v1805_v12 = vpop.eup %1804  ;;  %1830 = vrcp.f32 %v1004_v7  ;;  %v1005_v13 = vadd.f32 1.0, %v1803_v9 }
 0x277   : > { %v1807_v14 = vpop.eup %1806  ;;  %1094 = vst [vmem:[%s2641_s16 + $0x78] sm:$0xff] %v1805_v12  ;;  %1832 = vpow2.f32 %v1394_v10  ;;  %v1395_v15 = vmul.f32 -1.442695, %v885_v11 }
 0x278   : > { %v1809_v41 = vpop.eup %1808  ;;  %1834 = vrcp.f32 %v1005_v13  ;;  %v1006_v16 = vadd.f32 1.0, %v1807_v14 }
 0x279   : > { %v1811_v17 = vpop.eup %1810  ;;  %v1007_v18 = vadd.f32 1.0, %v1809_v41  ;;  %1836 = vpow2.f32 %v1395_v15 }
 0x27a   : > { %v1813_v19 = vpop.eup %1812  ;;  %1095 = vst [vmem:[%s2641_s16 + $0x80] sm:$0xff] %v1811_v17  ;;  %1838 = vrcp.f32 %v1006_v16 }
 0x27b   : > { %v1815_v42 = vpop.eup %1814  ;;  %1840 = vrcp.f32 %v1007_v18  ;;  %v1008_v20 = vadd.f32 1.0, %v1813_v19 }
 0x27c   : > { %v1817_v21 = vpop.eup %1816  ;;  %1096 = vst [vmem:[%s2641_s16 + $0x88] sm:$0xff] %v1815_v42 }
 0x27d   : > { %v1819_v22 = vpop.eup %1818  ;;  %1842 = vrcp.f32 %v1008_v20  ;;  %v1009_v23 = vadd.f32 1.0, %v1817_v21 }
 0x27e   : > { %v1821_v24 = vpop.eup %1820  ;;  %1097 = vst [vmem:[%s2641_s16 + $0x90] sm:$0xff] %v1819_v22 }
 0x27f   : > { %v1823_v25 = vpop.eup %1822  ;;  %1844 = vrcp.f32 %v1009_v23  ;;  %v1010_v26 = vadd.f32 1.0, %v1821_v24 }
 0x280   : > { %v1825_v27 = vpop.eup %1824  ;;  %1098 = vst [vmem:[%s2641_s16 + $0x98] sm:$0xff] %v1823_v25 }
 0x281   : > { %v1827_v28 = vpop.eup %1826  ;;  %1846 = vrcp.f32 %v1010_v26  ;;  %v1011_v29 = vadd.f32 1.0, %v1825_v27 }
 0x282   : > { %v1829_v30 = vpop.eup %1828  ;;  %1099 = vst [vmem:[%s2641_s16 + $0xa0] sm:$0xff] %v1827_v28 }
 0x283   : > { %v1831_v31 = vpop.eup %1830  ;;  %1848 = vrcp.f32 %v1011_v29  ;;  %v1012_v32 = vadd.f32 1.0, %v1829_v30 }
 0x284   : > { %v1833_v33 = vpop.eup %1832  ;;  %1100 = vst [vmem:[%s2641_s16 + $0xa8] sm:$0xff] %v1831_v31 }
 0x285   : > { %v1835_v34 = vpop.eup %1834  ;;  %1850 = vrcp.f32 %v1012_v32  ;;  %v1013_v35 = vadd.f32 1.0, %v1833_v33 }
 0x286   : > { %v1837_v36 = vpop.eup %1836  ;;  %1101 = vst [vmem:[%s2641_s16 + $0xb0] sm:$0xff] %v1835_v34 }
 0x287   : > { %v1839_v37 = vpop.eup %1838  ;;  %1852 = vrcp.f32 %v1013_v35  ;;  %v1014_v62 = vadd.f32 1.0, %v1837_v36 }
 0x288   : > { %v1841_v0 = vpop.eup %1840  ;;  %1102 = vst [vmem:[%s2641_s16 + $0xb8] sm:$0xff] %v1839_v37 }
 0x289   : > { %1103 = vst [vmem:[%s2641_s16 + $0xc0] sm:$0xff] %v1841_v0  ;;  %1854 = vrcp.f32 %v1014_v62 }
 0x28a   : > { %v1843_v38 = vpop.eup %1842 }
 0x28b   : > { %1104 = vst [vmem:[%s2641_s16 + $0xc8] sm:$0xff] %v1843_v38 }
 0x28c   : > { %v1845_v39 = vpop.eup %1844 }
 0x28d   : > { %1105 = vst [vmem:[%s2641_s16 + $0xd0] sm:$0xff] %v1845_v39 }
 0x28e   : > { %v1847_v40 = vpop.eup %1846 }
 0x28f   : > { %1106 = vst [vmem:[%s2641_s16 + $0xd8] sm:$0xff] %v1847_v40 }
 0x290   : > { %v1849_v43 = vpop.eup %1848 }
 0x291   : > { %1107 = vst [vmem:[%s2641_s16 + $0xe0] sm:$0xff] %v1849_v43 }
 0x292   : > { %v1851_v44 = vpop.eup %1850 }
 0x293   : > { %1108 = vst [vmem:[%s2641_s16 + $0xe8] sm:$0xff] %v1851_v44 }
 0x294   : > { %v1853_v45 = vpop.eup %1852 }
 0x295   : > { %1109 = vst [vmem:[%s2641_s16 + $0xf0] sm:$0xff] %v1853_v45 }
 0x296   : > { %v1855_v46 = vpop.eup %1854 }
 0x297   : > { %1110 = vst [vmem:[%s2641_s16 + $0xf8] sm:$0xff] %v1855_v46 }
 0x298   : > { %1977 = shalt.err (!%p1974_p13)
}
 0x299   : > { %s1978_s8 = scalar_lea.hbm %s2693_s7, 4096  ;;  %s1982_s28 = scalar_lea.hbm %s2745_s5, 8192 }
 0x29a   : > { %p1979_p7 = scmp.ne.s32.totalorder %s2693_s7, %s1978_s8  ;;  %p1983_p0 = scmp.lt.s32.totalorder %s2693_s7, %s2745_s5 }
 0x29b   : > { %p1984_p3 = scmp.lt.s32.totalorder %s1982_s28, %s1978_s8 }
 0x29c   : > { %p1980_p6 = pnand %p1979_p7, %p2764_p1 }
 0x29d   : > { %p1985_p12 = por %p1984_p3, %p1983_p0 }
 0x29e   : > { %p1981_p11 = pneg %p1980_p6 }
 0x2a0   : > { %p1986_p8 = pnand %p1985_p12, %p1981_p11 }
 0x2a2   : > { %1989 = shalt.err (!%p1986_p8)
}
 0x2a3   : > { %s2055_s16 = smov 256   ;;  %s2056_s17 = smov 16  }
 0x2a4   : > { %1595 = dma.vmem_to_hbm [thread:$0]  (%p2764_p1), %s2695_s12, 4096, %s2693_s7, %s1128_s20, %s2055_s16, %s2055_s16, %s2056_s17  }
 0x2a5 PF: > { %s1178_s19 = sand.u32 1, %s2028_s21   ;;  %p2765_p10 = scmp.ne.s32.totalorder %s2757_s13, 0 }
 0x2a6   : > { %p2766_p5 = scmp.ge.s32.totalorder %s2040_s24, 2  ;;  %s1179_s10 = scalar_lea.sflag [#allocation4], %s1178_s19 }
 0x2a8   : > { %p1611_p2 = pnand %p2766_p5, %p2765_p10 }
 0x2aa   : > { %p1612_p4 = pneg %p1611_p2 }
 0x2ac   : > { %2019 = dma.done.wait (%p1612_p4), %s1179_s10, 4096  }
 0x2ad   : > { %2021 = vsyncadd (%p1612_p4), %s1179_s10, 4294963200  ;;  %s1188_s27 = scalar_lea.sflag [#allocation10], %s1178_s19 }
 0x2ae   : > { %2023 = dma.done.wait (%p1612_p4), %s1188_s27, 2048  }
 0x2af   : > { %2025 = vsyncadd (%p1612_p4), %s1188_s27, 4294965248  ;;  %s2767_s30 = sld [smem:[#allocation16_spill]]  ;;  %p24_p1 = scmp.ge.s32.totalorder %s2113_s25, 4  }
 0x2b0   : > { %s2768_s21 = smov %s2032_s22  ;;  %s2769_s22 = smov %s2036_s23 }
 0x2b1   : > { %s2771_s24 = smov %s2113_s25  ;;  %26 = sbr.rel (!%p24_p1) target bundleno = 10 (0xa), region = 117 }
 0x2b5   : > { %s2770_s23 = smov %s2767_s30 }
 0x2b6   :  { %1193 = vsyncpa [#allocation3], 1 }
 0x2b7   :  { %1195 = vsyncpa [#allocation3 + $0x1], 1 }
 0x2b8   :  { %1196 = vsyncpa [#allocation6], 1 }
 0x2b9   :  { %1197 = vsyncpa [#allocation4], 1 }
 0x2ba   :  { %1199 = vsyncpa [#allocation4 + $0x1], 1 }
 0x2bb   :  { %1200 = vsyncpa [#allocation10], 1 }
 0x2bc   :  { %1202 = vsyncpa [#allocation10 + $0x1], 1 }

</bundles_post_ra>
